<compile_context>
chip_gen: v7x
topology: tpu7x:2x2x1
jax: 0.10.0
libtpu: 0.0.40
codegen_flags: <defaults>
</compile_context>

<pallas_src>
import functools
import inspect
import math

import jax
import jax.numpy as jnp
from jax.experimental import pallas as pl
from jax.experimental.pallas import tpu as pltpu


def _supports_pipeline_mode():
    if not hasattr(pl, "Buffered"):
        return False
    try:
        return "pipeline_mode" in inspect.signature(pl.BlockSpec).parameters
    except (TypeError, ValueError):
        return False


_PIPELINE_MODE_OK = _supports_pipeline_mode()


# -----------------------------------------------------------------------------
# Fused FFN kernel: one (batch, time-tile) grid step
# -----------------------------------------------------------------------------
def _ffn_fused_kernel(activation, gelu_approx, pad_l, t_valid, use_mask,
                      x_ref, w1_ref, b1_ref, w2_ref, b2_ref, *rest):
    """Refs (channels-first, time on lanes):
      x_ref : (Cin_p, t_padded) bf16  -- padded input row, resident per batch
      w1_ref: (F, K*Cin_p) bf16       b1_ref: (F, 1) f32
      w2_ref: (K, Cout, F) bf16       b2_ref: (Cout, 1) f32
      mask  : (1, tile) f32 (optional)
      o_ref : (Cout, tile)
      h_ref : (F, tile + K - 1) bf16 VMEM scratch  -- the FFN intermediate
    """
    if use_mask:
        mask_ref, o_ref, h_ref = rest
    else:
        mask_ref = None
        o_ref, h_ref = rest

    k = w2_ref.shape[0]
    f_ch, h_t = h_ref.shape                 # h_t = tile + k - 1
    c_out, t_tile = o_ref.shape
    halo = 2 * (k - 1)

    t0 = pl.program_id(1) * t_tile           # first output column of this tile

    # ---- x halo window out of the per-batch resident block --------------------
    # Dynamic loads are lane-aligned: start is a multiple of t_tile (itself a
    # multiple of 128 when there is more than one time tile) and the width is
    # rounded up to a multiple of 128; sub-128 shifts are done on the thin
    # (Cin) value below, never on the ref.
    if x_ref.shape[1] == t_tile + halo:      # single time tile -> static full block
        xw = x_ref[...]
    else:
        load_w = t_tile + (pl.cdiv(halo, 128) * 128 if halo else 0)
        xw = x_ref[:, pl.ds(pl.multiple_of(t0, t_tile), load_w)]

    # ---- conv_1 as ONE im2col matmul ------------------------------------------
    # Stack the K lane-shifted thin windows on the contraction axis and contract
    # K*Cin deep on the MXU (amortizes weight loads, removes K-1 f32 RMW passes).
    if k > 1:
        xi = jnp.concatenate([xw[:, tap:tap + h_t] for tap in range(k)], axis=0)
    else:
        xi = xw
    acc1 = jnp.dot(w1_ref[...], xi, preferred_element_type=jnp.float32)
    acc1 = acc1 + b1_ref[...]                 # (F,1) broadcast across time lanes

    if activation == "gelu":
        # approximate=True (tanh) runs on the EUP (otherwise idle slot); exact erf
        # is a long VPU polynomial.  bf16 MXU operands already preclude bit-exact
        # parity with torch, so tanh is the default; erf kept behind the flag.
        acc1 = jax.nn.gelu(acc1, approximate=gelu_approx)
    else:                                     # reference uses ReLU for non-'gelu'
        acc1 = jnp.maximum(acc1, 0.0)
    # dropout: identity at inference / p_dropout == 0
    # TODO(synk): training-mode stochastic dropout (pltpu.prng_*) not implemented.

    # ---- stage h (bf16) in VMEM ------------------------------------------------
    # Columns of h that fall in conv_2's zero padding (or past the real sequence
    # end) must be exactly zero.  Only boundary tiles pay the iota/compare/select;
    # interior tiles store the activation directly.
    needs_mask = jnp.logical_or(t0 < pad_l, t0 + h_t - pad_l > t_valid)

    @pl.when(needs_mask)
    def _():
        col = jax.lax.broadcasted_iota(jnp.int32, (1, h_t), 1) + (t0 - pad_l)
        valid = jnp.logical_and(col >= 0, col < t_valid)
        h_ref[...] = jnp.where(valid, acc1, 0.0).astype(h_ref.dtype)

    @pl.when(jnp.logical_not(needs_mask))
    def _():
        h_ref[...] = acc1.astype(h_ref.dtype)

    # ---- conv_2 ----------------------------------------------------------------
    # Per-tap F-deep matmuls over the full lane-aligned h window; the tap shift is
    # applied to the THIN (Cout, h_t) f32 result, never to the fat (F, *) operand.
    h = h_ref[...]
    acc2 = jnp.zeros((c_out, t_tile), jnp.float32)
    for tap in range(k):
        r = jnp.dot(w2_ref[tap], h, preferred_element_type=jnp.float32)  # (Cout, h_t)
        acc2 = acc2 + r[:, tap:tap + t_tile]
    acc2 = acc2 + b2_ref[...]                 # (Cout,1) broadcast across time lanes

    if use_mask:
        acc2 = acc2 * mask_ref[...]           # (1,tile) broadcast across sublanes

    o_ref[...] = acc2.astype(o_ref.dtype)


# -----------------------------------------------------------------------------
# Generation-aware sizing helpers
# -----------------------------------------------------------------------------
def _vmem_limit_bytes():
    """~3/4 of physical VMEM: ~48 MiB on v7x (64 MiB), ~96 MiB on v5e/v6e (128 MiB)."""
    try:
        info = pltpu.get_tpu_info()
        cap = int(getattr(info, "vmem_capacity_bytes", 0) or 0)
    except Exception:
        cap = 0
    if cap <= 0:
        return 48 * 1024 * 1024               # conservative default, safe everywhere
    return int(min(cap * 3 // 4, 100 * 1024 * 1024))


def _pick_time_tile(T, k, c_in_p, f_ch, c_out, vmem_limit, requested):
    if requested is not None:
        cap = max(128, (int(requested) // 128) * 128)
    else:
        cap = 1024 if vmem_limit >= 80 * 1024 * 1024 else 512
    # Per-time-column live bytes are dominated by the fat intermediate
    # (acc1 f32 + h bf16 ~ 6*F), plus the bf16 im2col operand and the f32 output.
    # Keep the live set well under the limit to leave room for double-buffered I/O
    # blocks, the resident x row and compiler temporaries.
    per_col = 6 * f_ch + 2 * k * c_in_p + 8 * c_out
    fit = ((vmem_limit // 3) // per_col // 128) * 128
    t_tile = int(max(128, min(cap, fit)))
    if T <= t_tile:
        return T, 1
    return t_tile, int(pl.cdiv(T, t_tile))


# -----------------------------------------------------------------------------
# Wrapper: PyTorch NCW in / NCW out, no transposes
# -----------------------------------------------------------------------------
def ffn_forward(x_ncw, params, *, kernel_size, activation=None, causal=False,
                x_mask_ncw=None, time_tile=None, gelu_approximate=True):
    """x_ncw: (B, Cin, T).  Returns (B, Cout, T) in x's dtype."""
    B, c_in, T = x_ncw.shape
    w1, b1, w2, b2 = params["w1"], params["b1"], params["w2"], params["b2"]
    f_ch = w1.shape[0]
    c_out = w2.shape[0]
    k = kernel_size
    out_dtype = x_ncw.dtype

    if causal:
        pad_l, pad_r = k - 1, 0
    else:
        pad_l, pad_r = (k - 1) // 2, k // 2
    halo = 2 * (k - 1)

    # Pad Cin to a bf16-packed sublane multiple so the in-kernel im2col
    # concatenation lands on vreg boundaries (zero rows contribute nothing).
    c_in_p = (-(-c_in // 16)) * 16 if k > 1 else c_in

    vmem_limit = _vmem_limit_bytes()
    t_tile, n_t = _pick_time_tile(T, k, c_in_p, f_ch, c_out, vmem_limit, time_tile)
    t_grid = n_t * t_tile
    h_t = t_tile + k - 1

    # Round the halo each tile loads past itself up to a lane multiple so all
    # dynamic ref loads are 128-aligned in both start and width.
    halo_ld = halo if n_t == 1 else (pl.cdiv(halo, 128) * 128 if halo else 0)

    # One cheap pad of the THIN input fused with the bf16 cast (single XLA pass);
    # conv padding for BOTH convs is folded in (2*pad each side).  The fat
    # intermediate is never padded or written to HBM at all.
    x_pad = jnp.pad(
        x_ncw,
        ((0, 0), (0, c_in_p - c_in),
         (2 * pad_l, (t_grid + halo_ld) - T - 2 * pad_l)),
    ).astype(jnp.bfloat16)
    t_padded = x_pad.shape[2]                 # t_grid + halo_ld

    # conv_1 weight: torch (F, Cin, K) -> (F, K*Cin_p) matching im2col row order
    # (row tap*Cin_p + c multiplies x[c, t + tap]).
    w1_t = jnp.transpose(w1, (0, 2, 1))       # (F, K, Cin)
    if c_in_p != c_in:
        w1_t = jnp.pad(w1_t, ((0, 0), (0, 0), (0, c_in_p - c_in)))
    w1_flat = w1_t.reshape(f_ch, k * c_in_p).astype(jnp.bfloat16)
    # conv_2 weight: torch (Cout, F, K) -> per-tap (K, Cout, F), bf16 for the MXU.
    w2_k = jnp.transpose(w2, (2, 0, 1)).astype(jnp.bfloat16)
    b1_c = b1.reshape(f_ch, 1).astype(jnp.float32)
    b2_c = b2.reshape(c_out, 1).astype(jnp.float32)

    use_mask = x_mask_ncw is not None
    args = [x_pad, w1_flat, b1_c, w2_k, b2_c]
    if use_mask:
        mask = x_mask_ncw.astype(jnp.float32)
        if t_grid != T:
            mask = jnp.pad(mask, ((0, 0), (0, 0), (0, t_grid - T)))
        args.append(mask)

    kernel = functools.partial(_ffn_fused_kernel, activation, gelu_approximate,
                               pad_l, T, use_mask)

    # Megacore: shard the batch axis across TensorCores when possible so the
    # per-batch resident x row is DMA'd to exactly one core; only fall back to
    # splitting time when there is a single batch.
    dim_sem = ("parallel", "arbitrary") if B > 1 else ("arbitrary", "parallel")

    flops = 2 * B * t_grid * k * (c_in_p * f_ch + f_ch * c_out)
    transcendentals = B * t_grid * f_ch if activation == "gelu" else 0
    bytes_accessed = (
        x_pad.size * 2 + w1_flat.size * 2 + w2_k.size * 2 + (f_ch + c_out) * 4
        + B * c_out * t_grid * jnp.dtype(out_dtype).itemsize
        + (B * t_grid * 4 if use_mask else 0))

    x_block_bytes = c_in_p * t_padded * 2

    # TODO(synk): for tiny-channel configs (Cin/F/Cout << 128), fold batch into the
    # lane axis to widen the matmul N dim and cut grid steps (review item 11).

    def build_specs(single_buffer):
        # Constant-index weight/bias blocks never change -> single-buffer them.
        w_kw = dict(pipeline_mode=pl.Buffered(1)) if single_buffer else {}
        # Resident x is constant along the inner time axis too; single-buffer it
        # when double-buffering would strain VMEM (v7x: 64 MiB physical).
        # TODO(synk): for x rows too big even single-buffered, switch to a
        # manual-DMA halo pipeline (memory_space=pl.ANY + make_async_copy).
        x_kw = dict(w_kw) if (single_buffer and
                              2 * x_block_bytes > 12 * 1024 * 1024) else {}
        in_specs = [
            # Full padded time extent per batch; block index constant along the
            # inner time axis so the block stays VMEM-resident (one DMA per batch).
            pl.BlockSpec((None, c_in_p, t_padded), lambda b, t: (b, 0, 0), **x_kw),
            pl.BlockSpec((f_ch, k * c_in_p), lambda b, t: (0, 0), **w_kw),
            pl.BlockSpec((f_ch, 1), lambda b, t: (0, 0), **w_kw),
            pl.BlockSpec((k, c_out, f_ch), lambda b, t: (0, 0, 0), **w_kw),
            pl.BlockSpec((c_out, 1), lambda b, t: (0, 0), **w_kw),
        ]
        if use_mask:
            in_specs.append(pl.BlockSpec((None, 1, t_tile), lambda b, t: (b, 0, t)))
        out_spec = pl.BlockSpec((None, c_out, t_tile), lambda b, t: (b, 0, t))
        return in_specs, out_spec

    def call(single_buffer):
        in_specs, out_spec = build_specs(single_buffer)
        return pl.pallas_call(
            kernel,
            out_shape=jax.ShapeDtypeStruct((B, c_out, t_grid), out_dtype),
            grid_spec=pltpu.PrefetchScalarGridSpec(
                num_scalar_prefetch=0,
                grid=(B, n_t),
                in_specs=in_specs,
                out_specs=out_spec,
                # The fat FFN intermediate lives here (bf16), never in HBM.
                scratch_shapes=[pltpu.VMEM((f_ch, h_t), jnp.bfloat16)],
            ),
            compiler_params=pltpu.CompilerParams(
                dimension_semantics=dim_sem,
                vmem_limit_bytes=vmem_limit,
            ),
            cost_estimate=pl.CostEstimate(
                flops=flops, transcendentals=transcendentals,
                bytes_accessed=bytes_accessed),
        )(*args)

    try:
        out = call(_PIPELINE_MODE_OK)
    except Exception:
        if not _PIPELINE_MODE_OK:
            raise
        # pipeline_mode=pl.Buffered not accepted by this jax/Mosaic combination;
        # fall back to default double-buffering (correctness unaffected).
        out = call(False)

    if t_grid != T:
        out = out[:, :, :T]
    return out


# -----------------------------------------------------------------------------
# Deterministic parameter init mirroring the PyTorch __init__ (torch layout)
# -----------------------------------------------------------------------------
def init_ffn_params(key, in_channels, out_channels, filter_channels, kernel_size):
    k1, k2, k3 = jax.random.split(key, 3)

    # conv_1.weight (F, Cin, K): kaiming_normal_(mode='fan_out', nonlinearity='relu')
    std1 = math.sqrt(2.0 / (filter_channels * kernel_size))
    w1 = std1 * jax.random.normal(
        k1, (filter_channels, in_channels, kernel_size), jnp.float32)

    # conv_1.bias: torch default U(-1/sqrt(fan_in), 1/sqrt(fan_in)), fan_in = Cin*K
    bound1 = 1.0 / math.sqrt(in_channels * kernel_size)
    b1 = jax.random.uniform(k2, (filter_channels,), jnp.float32,
                            minval=-bound1, maxval=bound1)

    # conv_2.weight (Cout, F, K): zeros_
    w2 = jnp.zeros((out_channels, filter_channels, kernel_size), jnp.float32)

    # conv_2.bias: torch default uniform, fan_in = F*K
    bound2 = 1.0 / math.sqrt(filter_channels * kernel_size)
    b2 = jax.random.uniform(k3, (out_channels,), jnp.float32,
                            minval=-bound2, maxval=bound2)

    return {"w1": w1, "b1": b1, "w2": w2, "b2": b2}


# -----------------------------------------------------------------------------
# Pure-JAX reference (f32) for validation
# -----------------------------------------------------------------------------
def _conv1d_ref(x, w, b):
    y = jax.lax.conv_general_dilated(
        x, w, window_strides=(1,), padding="VALID",
        dimension_numbers=("NCH", "OIH", "NCH"))
    return y + b[None, :, None]


def ffn_reference(x, params, *, kernel_size, activation=None, causal=False,
                  x_mask=None, gelu_approx=True):
    k = kernel_size
    pad_l, pad_r = (k - 1, 0) if causal else ((k - 1) // 2, k // 2)
    xp = jnp.pad(x, ((0, 0), (0, 0), (pad_l, pad_r)))
    h = _conv1d_ref(xp, params["w1"], params["b1"])
    h = (jax.nn.gelu(h, approximate=gelu_approx) if activation == "gelu"
         else jnp.maximum(h, 0.0))
    hp = jnp.pad(h, ((0, 0), (0, 0), (pad_l, pad_r)))
    y = _conv1d_ref(hp, params["w2"], params["b2"])
    return y if x_mask is None else y * x_mask


if __name__ == "__main__":
    # Small shapes consistent with the module: B=2, Cin=4, Cout=4, filter=32, K=3, T=16
    B, C_IN, C_OUT, FILTER, K, T = 2, 4, 4, 32, 3, 16

    key = jax.random.PRNGKey(0)
    kx, km, kp, kw2, kx2, km2 = jax.random.split(key, 6)

    x = jax.random.normal(kx, (B, C_IN, T), jnp.float32)               # NCW like PyTorch
    x_mask = (jax.random.uniform(km, (B, 1, T)) > 0.2).astype(jnp.float32)
    params = init_ffn_params(kp, C_IN, C_OUT, FILTER, K)

    # (a) module exactly as initialized (conv_2.weight == 0), same padding, with mask
    out = jax.block_until_ready(
        ffn_forward(x, params, kernel_size=K, activation=None,
                    causal=False, x_mask_ncw=x_mask))
    assert out.shape == (B, C_OUT, T), out.shape
    assert bool(jnp.all(jnp.isfinite(out)))
    ref = ffn_reference(x, params, kernel_size=K, activation=None,
                        causal=False, x_mask=x_mask)
    assert bool(jnp.max(jnp.abs(out - ref)) < 5e-2)

    # (b) non-zero conv_2 weight, same padding, with mask (bf16 MXU vs f32 reference)
    params_b = dict(params)
    params_b["w2"] = 0.1 * jax.random.normal(kw2, (C_OUT, FILTER, K), jnp.float32)
    out_b = jax.block_until_ready(
        ffn_forward(x, params_b, kernel_size=K, activation=None,
                    causal=False, x_mask_ncw=x_mask))
    ref_b = ffn_reference(x, params_b, kernel_size=K, activation=None,
                          causal=False, x_mask=x_mask)
    assert bool(jnp.max(jnp.abs(out_b - ref_b)) < 5e-2)

    # (c) causal padding, no mask
    out_c = jax.block_until_ready(
        ffn_forward(x, params_b, kernel_size=K, activation=None, causal=True))
    ref_c = ffn_reference(x, params_b, kernel_size=K, activation=None, causal=True)
    assert bool(jnp.max(jnp.abs(out_c - ref_c)) < 5e-2)

    # (d) gelu activation + multiple time tiles (boundary, interior and tail tiles)
    T2 = 300
    x2 = jax.random.normal(kx2, (B, C_IN, T2), jnp.float32)
    mask2 = (jax.random.uniform(km2, (B, 1, T2)) > 0.2).astype(jnp.float32)
    out_d = jax.block_until_ready(
        ffn_forward(x2, params_b, kernel_size=K, activation="gelu",
                    causal=False, x_mask_ncw=mask2, time_tile=128))
    assert out_d.shape == (B, C_OUT, T2), out_d.shape
    ref_d = ffn_reference(x2, params_b, kernel_size=K, activation="gelu",
                          causal=False, x_mask=mask2, gelu_approx=True)
    assert bool(jnp.max(jnp.abs(out_d - ref_d)) < 5e-2)

    print("KERNEL_OK")
</pallas_src>

<mosaic_0001>
module attributes {stable_mosaic.version = 11 : i64} {
  func.func @_ffn_fused_kernel(%arg0: i32, %arg1: i32, %arg2: memref<1x16x20xbf16, #tpu.memory_space<vmem>>, %arg3: memref<32x48xbf16, #tpu.memory_space<vmem>>, %arg4: memref<32x1xf32, #tpu.memory_space<vmem>>, %arg5: memref<3x4x32xbf16, #tpu.memory_space<vmem>>, %arg6: memref<4x1xf32, #tpu.memory_space<vmem>>, %arg7: memref<1x1x16xf32, #tpu.memory_space<vmem>>, %arg8: memref<1x4x16xf32, #tpu.memory_space<vmem>>, %arg9: memref<32x18xbf16, #tpu.memory_space<vmem>>) attributes {dimension_semantics = [#tpu.dimension_semantics<parallel>, #tpu.dimension_semantics<arbitrary>], iteration_bounds = array<i64: 2, 1>, scalar_prefetch = 0 : i64, scratch_operands = 1 : i64, tpu.core_type = #tpu.core_type<tc>, window_params = [{transform_indices = @transform_0, window_bounds = array<i64: 1, 16, 20>}, {pipeline_mode = #tpu.pipeline_mode<synchronous>, transform_indices = @transform_1, window_bounds = array<i64: 32, 48>}, {pipeline_mode = #tpu.pipeline_mode<synchronous>, transform_indices = @transform_2, window_bounds = array<i64: 32, 1>}, {pipeline_mode = #tpu.pipeline_mode<synchronous>, transform_indices = @transform_3, window_bounds = array<i64: 3, 4, 32>}, {pipeline_mode = #tpu.pipeline_mode<synchronous>, transform_indices = @transform_4, window_bounds = array<i64: 4, 1>}, {transform_indices = @transform_5, window_bounds = array<i64: 1, 1, 16>}, {transform_indices = @transform_6, window_bounds = array<i64: 1, 4, 16>}]} {
    %c16_i32 = arith.constant 16 : i32
    %0 = arith.muli %arg1, %c16_i32 : i32
    %c0 = arith.constant 0 : index
    %c0_0 = arith.constant 0 : index
    %c0_1 = arith.constant 0 : index
    %1 = vector.load %arg2[%c0, %c0_0, %c0_1] : memref<1x16x20xbf16, #tpu.memory_space<vmem>>, vector<1x16x20xbf16>
    %2 = vector.shape_cast %1 : vector<1x16x20xbf16> to vector<16x20xbf16>
    %3 = vector.extract_strided_slice %2 {offsets = [0, 0], sizes = [16, 18], strides = [1, 1]} : vector<16x20xbf16> to vector<16x18xbf16>
    %4 = vector.extract_strided_slice %2 {offsets = [0, 1], sizes = [16, 18], strides = [1, 1]} : vector<16x20xbf16> to vector<16x18xbf16>
    %5 = vector.extract_strided_slice %2 {offsets = [0, 2], sizes = [16, 18], strides = [1, 1]} : vector<16x20xbf16> to vector<16x18xbf16>
    %6 = tpu.concatenate %3, %4, %5 in 0 : vector<16x18xbf16>, vector<16x18xbf16>, vector<16x18xbf16> -> vector<48x18xbf16>
    %c0_2 = arith.constant 0 : index
    %c0_3 = arith.constant 0 : index
    %7 = vector.load %arg3[%c0_2, %c0_3] : memref<32x48xbf16, #tpu.memory_space<vmem>>, vector<32x48xbf16>
    %cst = arith.constant dense<0.000000e+00> : vector<32x18xf32>
    %8 = tpu.matmul %7, %6, %cst {dimension_numbers = #tpu.dot_dimension_numbers<[1], [0], [0], [1], [0, 0, 1, 1], [], []>} : vector<32x48xbf16>, vector<48x18xbf16>, vector<32x18xf32> -> vector<32x18xf32>
    %c0_4 = arith.constant 0 : index
    %c0_5 = arith.constant 0 : index
    %9 = vector.load %arg4[%c0_4, %c0_5] : memref<32x1xf32, #tpu.memory_space<vmem>>, vector<32x1xf32>
    %10 = vector.broadcast %9 : vector<32x1xf32> to vector<32x18xf32>
    %11 = arith.addf %8, %10 : vector<32x18xf32>
    %cst_6 = arith.constant 0.000000e+00 : f32
    %12 = vector.broadcast %cst_6 : f32 to vector<32x18xf32>
    %13 = arith.maximumf %11, %12 : vector<32x18xf32>
    %c1_i32 = arith.constant 1 : i32
    %14 = arith.cmpi slt, %0, %c1_i32 : i32
    %c18_i32 = arith.constant 18 : i32
    %15 = arith.addi %0, %c18_i32 : i32
    %c1_i32_7 = arith.constant 1 : i32
    %16 = arith.subi %15, %c1_i32_7 : i32
    %c16_i32_8 = arith.constant 16 : i32
    %17 = arith.cmpi sgt, %16, %c16_i32_8 : i32
    %18 = arith.ori %14, %17 : i1
    %19 = arith.extui %18 : i1 to i32
    %c0_i32 = arith.constant 0 : i32
    %20 = arith.cmpi ne, %19, %c0_i32 : i32
    scf.if %20 {
      %51 = tpu.iota {dimensions = array<i32: 1>} : vector<1x18xi32>
      %c1_i32_31 = arith.constant 1 : i32
      %52 = arith.subi %0, %c1_i32_31 : i32
      %53 = vector.broadcast %52 : i32 to vector<1x18xi32>
      %54 = arith.addi %51, %53 : vector<1x18xi32>
      %c0_i32_32 = arith.constant 0 : i32
      %55 = vector.broadcast %c0_i32_32 : i32 to vector<1x18xi32>
      %56 = arith.cmpi sge, %54, %55 : vector<1x18xi32>
      %c16_i32_33 = arith.constant 16 : i32
      %57 = vector.broadcast %c16_i32_33 : i32 to vector<1x18xi32>
      %58 = arith.cmpi slt, %54, %57 : vector<1x18xi32>
      %59 = arith.andi %56, %58 : vector<1x18xi1>
      %cst_34 = arith.constant 0.000000e+00 : f32
      %60 = vector.shape_cast %59 : vector<1x18xi1> to vector<1x18xi1>
      %61 = vector.broadcast %60 : vector<1x18xi1> to vector<32x18xi1>
      %62 = vector.broadcast %cst_34 : f32 to vector<32x18xf32>
      %63 = arith.select %61, %13, %62 : vector<32x18xi1>, vector<32x18xf32>
      %64 = arith.truncf %63 : vector<32x18xf32> to vector<32x18xbf16>
      %c0_35 = arith.constant 0 : index
      %c0_36 = arith.constant 0 : index
      %65 = vector.load %arg9[%c0_35, %c0_36] : memref<32x18xbf16, #tpu.memory_space<vmem>>, vector<32x18xbf16>
      tpu.vector_store %arg9[%c0_35, %c0_36], %64 {strides = array<i32>} : memref<32x18xbf16, #tpu.memory_space<vmem>>, vector<32x18xbf16>,
    } else {
    }
    %true = arith.constant true
    %21 = arith.xori %18, %true : i1
    %22 = arith.extui %21 : i1 to i32
    %c0_i32_9 = arith.constant 0 : i32
    %23 = arith.cmpi ne, %22, %c0_i32_9 : i32
    scf.if %23 {
      %51 = arith.truncf %13 : vector<32x18xf32> to vector<32x18xbf16>
      %c0_31 = arith.constant 0 : index
      %c0_32 = arith.constant 0 : index
      %52 = vector.load %arg9[%c0_31, %c0_32] : memref<32x18xbf16, #tpu.memory_space<vmem>>, vector<32x18xbf16>
      tpu.vector_store %arg9[%c0_31, %c0_32], %51 {strides = array<i32>} : memref<32x18xbf16, #tpu.memory_space<vmem>>, vector<32x18xbf16>,
    } else {
    }
    %c0_10 = arith.constant 0 : index
    %c0_11 = arith.constant 0 : index
    %24 = vector.load %arg9[%c0_10, %c0_11] : memref<32x18xbf16, #tpu.memory_space<vmem>>, vector<32x18xbf16>
    %cst_12 = arith.constant 0.000000e+00 : f32
    %25 = vector.broadcast %cst_12 : f32 to vector<4x16xf32>
    %c0_13 = arith.constant 0 : index
    %c0_14 = arith.constant 0 : index
    %c0_15 = arith.constant 0 : index
    %26 = vector.load %arg5[%c0_13, %c0_14, %c0_15] : memref<3x4x32xbf16, #tpu.memory_space<vmem>>, vector<1x4x32xbf16>
    %27 = vector.shape_cast %26 : vector<1x4x32xbf16> to vector<4x32xbf16>
    %cst_16 = arith.constant dense<0.000000e+00> : vector<4x18xf32>
    %28 = tpu.matmul %27, %24, %cst_16 {dimension_numbers = #tpu.dot_dimension_numbers<[1], [0], [0], [1], [0, 0, 1, 1], [], []>} : vector<4x32xbf16>, vector<32x18xbf16>, vector<4x18xf32> -> vector<4x18xf32>
    %29 = vector.extract_strided_slice %28 {offsets = [0, 0], sizes = [4, 16], strides = [1, 1]} : vector<4x18xf32> to vector<4x16xf32>
    %30 = arith.addf %25, %29 : vector<4x16xf32>
    %c1 = arith.constant 1 : index
    %c0_17 = arith.constant 0 : index
    %c0_18 = arith.constant 0 : index
    %31 = vector.load %arg5[%c1, %c0_17, %c0_18] : memref<3x4x32xbf16, #tpu.memory_space<vmem>>, vector<1x4x32xbf16>
    %32 = vector.shape_cast %31 : vector<1x4x32xbf16> to vector<4x32xbf16>
    %cst_19 = arith.constant dense<0.000000e+00> : vector<4x18xf32>
    %33 = tpu.matmul %32, %24, %cst_19 {dimension_numbers = #tpu.dot_dimension_numbers<[1], [0], [0], [1], [0, 0, 1, 1], [], []>} : vector<4x32xbf16>, vector<32x18xbf16>, vector<4x18xf32> -> vector<4x18xf32>
    %34 = vector.extract_strided_slice %33 {offsets = [0, 1], sizes = [4, 16], strides = [1, 1]} : vector<4x18xf32> to vector<4x16xf32>
    %35 = arith.addf %30, %34 : vector<4x16xf32>
    %c2 = arith.constant 2 : index
    %c0_20 = arith.constant 0 : index
    %c0_21 = arith.constant 0 : index
    %36 = vector.load %arg5[%c2, %c0_20, %c0_21] : memref<3x4x32xbf16, #tpu.memory_space<vmem>>, vector<1x4x32xbf16>
    %37 = vector.shape_cast %36 : vector<1x4x32xbf16> to vector<4x32xbf16>
    %cst_22 = arith.constant dense<0.000000e+00> : vector<4x18xf32>
    %38 = tpu.matmul %37, %24, %cst_22 {dimension_numbers = #tpu.dot_dimension_numbers<[1], [0], [0], [1], [0, 0, 1, 1], [], []>} : vector<4x32xbf16>, vector<32x18xbf16>, vector<4x18xf32> -> vector<4x18xf32>
    %39 = vector.extract_strided_slice %38 {offsets = [0, 2], sizes = [4, 16], strides = [1, 1]} : vector<4x18xf32> to vector<4x16xf32>
    %40 = arith.addf %35, %39 : vector<4x16xf32>
    %c0_23 = arith.constant 0 : index
    %c0_24 = arith.constant 0 : index
    %41 = vector.load %arg6[%c0_23, %c0_24] : memref<4x1xf32, #tpu.memory_space<vmem>>, vector<4x1xf32>
    %42 = vector.broadcast %41 : vector<4x1xf32> to vector<4x16xf32>
    %43 = arith.addf %40, %42 : vector<4x16xf32>
    %c0_25 = arith.constant 0 : index
    %c0_26 = arith.constant 0 : index
    %c0_27 = arith.constant 0 : index
    %44 = vector.load %arg7[%c0_25, %c0_26, %c0_27] : memref<1x1x16xf32, #tpu.memory_space<vmem>>, vector<1x1x16xf32>
    %45 = vector.shape_cast %44 : vector<1x1x16xf32> to vector<1x16xf32>
    %46 = vector.broadcast %45 : vector<1x16xf32> to vector<4x16xf32>
    %47 = arith.mulf %43, %46 : vector<4x16xf32>
    %c0_28 = arith.constant 0 : index
    %c0_29 = arith.constant 0 : index
    %c0_30 = arith.constant 0 : index
    %48 = vector.load %arg8[%c0_28, %c0_29, %c0_30] : memref<1x4x16xf32, #tpu.memory_space<vmem>>, vector<1x4x16xf32>
    %49 = vector.shape_cast %48 : vector<1x4x16xf32> to vector<4x16xf32>
    %50 = vector.shape_cast %47 : vector<4x16xf32> to vector<1x4x16xf32>
    tpu.vector_store %arg8[%c0_28, %c0_29, %c0_30], %50 {strides = array<i32>} : memref<1x4x16xf32, #tpu.memory_space<vmem>>, vector<1x4x16xf32>,
    return
  }
  func.func @transform_0(%arg0: i32, %arg1: i32) -> (i32, i32, i32) {
    %c0_i32 = arith.constant 0 : i32
    %c0_i32_0 = arith.constant 0 : i32
    %c0_i32_1 = arith.constant 0 : i32
    return %arg0, %c0_i32, %c0_i32_0 : i32, i32, i32
  }
  func.func @transform_1(%arg0: i32, %arg1: i32) -> (i32, i32) {
    %c0_i32 = arith.constant 0 : i32
    %c0_i32_0 = arith.constant 0 : i32
    %c0_i32_1 = arith.constant 0 : i32
    return %c0_i32, %c0_i32_0 : i32, i32
  }
  func.func @transform_2(%arg0: i32, %arg1: i32) -> (i32, i32) {
    %c0_i32 = arith.constant 0 : i32
    %c0_i32_0 = arith.constant 0 : i32
    %c0_i32_1 = arith.constant 0 : i32
    return %c0_i32, %c0_i32_0 : i32, i32
  }
  func.func @transform_3(%arg0: i32, %arg1: i32) -> (i32, i32, i32) {
    %c0_i32 = arith.constant 0 : i32
    %c0_i32_0 = arith.constant 0 : i32
    %c0_i32_1 = arith.constant 0 : i32
    %c0_i32_2 = arith.constant 0 : i32
    return %c0_i32, %c0_i32_0, %c0_i32_1 : i32, i32, i32
  }
  func.func @transform_4(%arg0: i32, %arg1: i32) -> (i32, i32) {
    %c0_i32 = arith.constant 0 : i32
    %c0_i32_0 = arith.constant 0 : i32
    %c0_i32_1 = arith.constant 0 : i32
    return %c0_i32, %c0_i32_0 : i32, i32
  }
  func.func @transform_5(%arg0: i32, %arg1: i32) -> (i32, i32, i32) {
    %c0_i32 = arith.constant 0 : i32
    %c0_i32_0 = arith.constant 0 : i32
    return %arg0, %c0_i32, %arg1 : i32, i32, i32
  }
  func.func @transform_6(%arg0: i32, %arg1: i32) -> (i32, i32, i32) {
    %c0_i32 = arith.constant 0 : i32
    %c0_i32_0 = arith.constant 0 : i32
    return %arg0, %c0_i32, %arg1 : i32, i32, i32
  }
}

module attributes {stable_mosaic.version = 11 : i64} {
  func.func @_ffn_fused_kernel(%arg0: i32, %arg1: i32, %arg2: memref<1x16x20xbf16, #tpu.memory_space<vmem>>, %arg3: memref<32x48xbf16, #tpu.memory_space<vmem>>, %arg4: memref<32x1xf32, #tpu.memory_space<vmem>>, %arg5: memref<3x4x32xbf16, #tpu.memory_space<vmem>>, %arg6: memref<4x1xf32, #tpu.memory_space<vmem>>, %arg7: memref<1x1x16xf32, #tpu.memory_space<vmem>>, %arg8: memref<1x4x16xf32, #tpu.memory_space<vmem>>, %arg9: memref<32x18xbf16, #tpu.memory_space<vmem>>) attributes {dimension_semantics = [#tpu.dimension_semantics<parallel>, #tpu.dimension_semantics<arbitrary>], iteration_bounds = array<i64: 2, 1>, scalar_prefetch = 0 : i64, scratch_operands = 1 : i64, tpu.core_type = #tpu.core_type<tc>, window_params = [{transform_indices = @transform_0, window_bounds = array<i64: 1, 16, 20>}, {pipeline_mode = #tpu.pipeline_mode<synchronous>, transform_indices = @transform_1, window_bounds = array<i64: 32, 48>}, {pipeline_mode = #tpu.pipeline_mode<synchronous>, transform_indices = @transform_2, window_bounds = array<i64: 32, 1>}, {pipeline_mode = #tpu.pipeline_mode<synchronous>, transform_indices = @transform_3, window_bounds = array<i64: 3, 4, 32>}, {pipeline_mode = #tpu.pipeline_mode<synchronous>, transform_indices = @transform_4, window_bounds = array<i64: 4, 1>}, {transform_indices = @transform_5, window_bounds = array<i64: 1, 1, 16>}, {transform_indices = @transform_6, window_bounds = array<i64: 1, 4, 16>}]} {
    %c16_i32 = arith.constant 16 : i32
    %0 = arith.muli %arg1, %c16_i32 : i32
    %c0 = arith.constant 0 : index
    %c0_0 = arith.constant 0 : index
    %c0_1 = arith.constant 0 : index
    %1 = vector.load %arg2[%c0, %c0_0, %c0_1] : memref<1x16x20xbf16, #tpu.memory_space<vmem>>, vector<1x16x20xbf16>
    %2 = vector.shape_cast %1 : vector<1x16x20xbf16> to vector<16x20xbf16>
    %3 = vector.extract_strided_slice %2 {offsets = [0, 0], sizes = [16, 18], strides = [1, 1]} : vector<16x20xbf16> to vector<16x18xbf16>
    %4 = vector.extract_strided_slice %2 {offsets = [0, 1], sizes = [16, 18], strides = [1, 1]} : vector<16x20xbf16> to vector<16x18xbf16>
    %5 = vector.extract_strided_slice %2 {offsets = [0, 2], sizes = [16, 18], strides = [1, 1]} : vector<16x20xbf16> to vector<16x18xbf16>
    %6 = tpu.concatenate %3, %4, %5 in 0 : vector<16x18xbf16>, vector<16x18xbf16>, vector<16x18xbf16> -> vector<48x18xbf16>
    %c0_2 = arith.constant 0 : index
    %c0_3 = arith.constant 0 : index
    %7 = vector.load %arg3[%c0_2, %c0_3] : memref<32x48xbf16, #tpu.memory_space<vmem>>, vector<32x48xbf16>
    %cst = arith.constant dense<0.000000e+00> : vector<32x18xf32>
    %8 = tpu.matmul %7, %6, %cst {dimension_numbers = #tpu.dot_dimension_numbers<[1], [0], [0], [1], [0, 0, 1, 1], [], []>} : vector<32x48xbf16>, vector<48x18xbf16>, vector<32x18xf32> -> vector<32x18xf32>
    %c0_4 = arith.constant 0 : index
    %c0_5 = arith.constant 0 : index
    %9 = vector.load %arg4[%c0_4, %c0_5] : memref<32x1xf32, #tpu.memory_space<vmem>>, vector<32x1xf32>
    %10 = vector.broadcast %9 : vector<32x1xf32> to vector<32x18xf32>
    %11 = arith.addf %8, %10 : vector<32x18xf32>
    %cst_6 = arith.constant 0.000000e+00 : f32
    %12 = vector.broadcast %cst_6 : f32 to vector<32x18xf32>
    %13 = arith.maximumf %11, %12 : vector<32x18xf32>
    %c1_i32 = arith.constant 1 : i32
    %14 = arith.cmpi slt, %0, %c1_i32 : i32
    %c18_i32 = arith.constant 18 : i32
    %15 = arith.addi %0, %c18_i32 : i32
    %c1_i32_7 = arith.constant 1 : i32
    %16 = arith.subi %15, %c1_i32_7 : i32
    %c16_i32_8 = arith.constant 16 : i32
    %17 = arith.cmpi sgt, %16, %c16_i32_8 : i32
    %18 = arith.ori %14, %17 : i1
    %19 = arith.extui %18 : i1 to i32
    %c0_i32 = arith.constant 0 : i32
    %20 = arith.cmpi ne, %19, %c0_i32 : i32
    scf.if %20 {
      %51 = tpu.iota {dimensions = array<i32: 1>} : vector<1x18xi32>
      %c1_i32_31 = arith.constant 1 : i32
      %52 = arith.subi %0, %c1_i32_31 : i32
      %53 = vector.broadcast %52 : i32 to vector<1x18xi32>
      %54 = arith.addi %51, %53 : vector<1x18xi32>
      %c0_i32_32 = arith.constant 0 : i32
      %55 = vector.broadcast %c0_i32_32 : i32 to vector<1x18xi32>
      %56 = arith.cmpi sge, %54, %55 : vector<1x18xi32>
      %c16_i32_33 = arith.constant 16 : i32
      %57 = vector.broadcast %c16_i32_33 : i32 to vector<1x18xi32>
      %58 = arith.cmpi slt, %54, %57 : vector<1x18xi32>
      %59 = arith.andi %56, %58 : vector<1x18xi1>
      %cst_34 = arith.constant 0.000000e+00 : f32
      %60 = vector.shape_cast %59 : vector<1x18xi1> to vector<1x18xi1>
      %61 = vector.broadcast %60 : vector<1x18xi1> to vector<32x18xi1>
      %62 = vector.broadcast %cst_34 : f32 to vector<32x18xf32>
      %63 = arith.select %61, %13, %62 : vector<32x18xi1>, vector<32x18xf32>
      %64 = arith.truncf %63 : vector<32x18xf32> to vector<32x18xbf16>
      %c0_35 = arith.constant 0 : index
      %c0_36 = arith.constant 0 : index
      %65 = vector.load %arg9[%c0_35, %c0_36] : memref<32x18xbf16, #tpu.memory_space<vmem>>, vector<32x18xbf16>
      tpu.vector_store %arg9[%c0_35, %c0_36], %64 {strides = array<i32>} : memref<32x18xbf16, #tpu.memory_space<vmem>>, vector<32x18xbf16>,
    } else {
    }
    %true = arith.constant true
    %21 = arith.xori %18, %true : i1
    %22 = arith.extui %21 : i1 to i32
    %c0_i32_9 = arith.constant 0 : i32
    %23 = arith.cmpi ne, %22, %c0_i32_9 : i32
    scf.if %23 {
      %51 = arith.truncf %13 : vector<32x18xf32> to vector<32x18xbf16>
      %c0_31 = arith.constant 0 : index
      %c0_32 = arith.constant 0 : index
      %52 = vector.load %arg9[%c0_31, %c0_32] : memref<32x18xbf16, #tpu.memory_space<vmem>>, vector<32x18xbf16>
      tpu.vector_store %arg9[%c0_31, %c0_32], %51 {strides = array<i32>} : memref<32x18xbf16, #tpu.memory_space<vmem>>, vector<32x18xbf16>,
    } else {
    }
    %c0_10 = arith.constant 0 : index
    %c0_11 = arith.constant 0 : index
    %24 = vector.load %arg9[%c0_10, %c0_11] : memref<32x18xbf16, #tpu.memory_space<vmem>>, vector<32x18xbf16>
    %cst_12 = arith.constant 0.000000e+00 : f32
    %25 = vector.broadcast %cst_12 : f32 to vector<4x16xf32>
    %c0_13 = arith.constant 0 : index
    %c0_14 = arith.constant 0 : index
    %c0_15 = arith.constant 0 : index
    %26 = vector.load %arg5[%c0_13, %c0_14, %c0_15] : memref<3x4x32xbf16, #tpu.memory_space<vmem>>, vector<1x4x32xbf16>
    %27 = vector.shape_cast %26 : vector<1x4x32xbf16> to vector<4x32xbf16>
    %cst_16 = arith.constant dense<0.000000e+00> : vector<4x18xf32>
    %28 = tpu.matmul %27, %24, %cst_16 {dimension_numbers = #tpu.dot_dimension_numbers<[1], [0], [0], [1], [0, 0, 1, 1], [], []>} : vector<4x32xbf16>, vector<32x18xbf16>, vector<4x18xf32> -> vector<4x18xf32>
    %29 = vector.extract_strided_slice %28 {offsets = [0, 0], sizes = [4, 16], strides = [1, 1]} : vector<4x18xf32> to vector<4x16xf32>
    %30 = arith.addf %25, %29 : vector<4x16xf32>
    %c1 = arith.constant 1 : index
    %c0_17 = arith.constant 0 : index
    %c0_18 = arith.constant 0 : index
    %31 = vector.load %arg5[%c1, %c0_17, %c0_18] : memref<3x4x32xbf16, #tpu.memory_space<vmem>>, vector<1x4x32xbf16>
    %32 = vector.shape_cast %31 : vector<1x4x32xbf16> to vector<4x32xbf16>
    %cst_19 = arith.constant dense<0.000000e+00> : vector<4x18xf32>
    %33 = tpu.matmul %32, %24, %cst_19 {dimension_numbers = #tpu.dot_dimension_numbers<[1], [0], [0], [1], [0, 0, 1, 1], [], []>} : vector<4x32xbf16>, vector<32x18xbf16>, vector<4x18xf32> -> vector<4x18xf32>
    %34 = vector.extract_strided_slice %33 {offsets = [0, 1], sizes = [4, 16], strides = [1, 1]} : vector<4x18xf32> to vector<4x16xf32>
    %35 = arith.addf %30, %34 : vector<4x16xf32>
    %c2 = arith.constant 2 : index
    %c0_20 = arith.constant 0 : index
    %c0_21 = arith.constant 0 : index
    %36 = vector.load %arg5[%c2, %c0_20, %c0_21] : memref<3x4x32xbf16, #tpu.memory_space<vmem>>, vector<1x4x32xbf16>
    %37 = vector.shape_cast %36 : vector<1x4x32xbf16> to vector<4x32xbf16>
    %cst_22 = arith.constant dense<0.000000e+00> : vector<4x18xf32>
    %38 = tpu.matmul %37, %24, %cst_22 {dimension_numbers = #tpu.dot_dimension_numbers<[1], [0], [0], [1], [0, 0, 1, 1], [], []>} : vector<4x32xbf16>, vector<32x18xbf16>, vector<4x18xf32> -> vector<4x18xf32>
    %39 = vector.extract_strided_slice %38 {offsets = [0, 2], sizes = [4, 16], strides = [1, 1]} : vector<4x18xf32> to vector<4x16xf32>
    %40 = arith.addf %35, %39 : vector<4x16xf32>
    %c0_23 = arith.constant 0 : index
    %c0_24 = arith.constant 0 : index
    %41 = vector.load %arg6[%c0_23, %c0_24] : memref<4x1xf32, #tpu.memory_space<vmem>>, vector<4x1xf32>
    %42 = vector.broadcast %41 : vector<4x1xf32> to vector<4x16xf32>
    %43 = arith.addf %40, %42 : vector<4x16xf32>
    %c0_25 = arith.constant 0 : index
    %c0_26 = arith.constant 0 : index
    %c0_27 = arith.constant 0 : index
    %44 = vector.load %arg7[%c0_25, %c0_26, %c0_27] : memref<1x1x16xf32, #tpu.memory_space<vmem>>, vector<1x1x16xf32>
    %45 = vector.shape_cast %44 : vector<1x1x16xf32> to vector<1x16xf32>
    %46 = vector.broadcast %45 : vector<1x16xf32> to vector<4x16xf32>
    %47 = arith.mulf %43, %46 : vector<4x16xf32>
    %c0_28 = arith.constant 0 : index
    %c0_29 = arith.constant 0 : index
    %c0_30 = arith.constant 0 : index
    %48 = vector.load %arg8[%c0_28, %c0_29, %c0_30] : memref<1x4x16xf32, #tpu.memory_space<vmem>>, vector<1x4x16xf32>
    %49 = vector.shape_cast %48 : vector<1x4x16xf32> to vector<4x16xf32>
    %50 = vector.shape_cast %47 : vector<4x16xf32> to vector<1x4x16xf32>
    tpu.vector_store %arg8[%c0_28, %c0_29, %c0_30], %50 {strides = array<i32>} : memref<1x4x16xf32, #tpu.memory_space<vmem>>, vector<1x4x16xf32>,
    return
  }
  func.func @transform_0(%arg0: i32, %arg1: i32) -> (i32, i32, i32) {
    %c0_i32 = arith.constant 0 : i32
    %c0_i32_0 = arith.constant 0 : i32
    %c0_i32_1 = arith.constant 0 : i32
    return %arg0, %c0_i32, %c0_i32_0 : i32, i32, i32
  }
  func.func @transform_1(%arg0: i32, %arg1: i32) -> (i32, i32) {
    %c0_i32 = arith.constant 0 : i32
    %c0_i32_0 = arith.constant 0 : i32
    %c0_i32_1 = arith.constant 0 : i32
    return %c0_i32, %c0_i32_0 : i32, i32
  }
  func.func @transform_2(%arg0: i32, %arg1: i32) -> (i32, i32) {
    %c0_i32 = arith.constant 0 : i32
    %c0_i32_0 = arith.constant 0 : i32
    %c0_i32_1 = arith.constant 0 : i32
    return %c0_i32, %c0_i32_0 : i32, i32
  }
  func.func @transform_3(%arg0: i32, %arg1: i32) -> (i32, i32, i32) {
    %c0_i32 = arith.constant 0 : i32
    %c0_i32_0 = arith.constant 0 : i32
    %c0_i32_1 = arith.constant 0 : i32
    %c0_i32_2 = arith.constant 0 : i32
    return %c0_i32, %c0_i32_0, %c0_i32_1 : i32, i32, i32
  }
  func.func @transform_4(%arg0: i32, %arg1: i32) -> (i32, i32) {
    %c0_i32 = arith.constant 0 : i32
    %c0_i32_0 = arith.constant 0 : i32
    %c0_i32_1 = arith.constant 0 : i32
    return %c0_i32, %c0_i32_0 : i32, i32
  }
  func.func @transform_5(%arg0: i32, %arg1: i32) -> (i32, i32, i32) {
    %c0_i32 = arith.constant 0 : i32
    %c0_i32_0 = arith.constant 0 : i32
    return %arg0, %c0_i32, %arg1 : i32, i32, i32
  }
  func.func @transform_6(%arg0: i32, %arg1: i32) -> (i32, i32, i32) {
    %c0_i32 = arith.constant 0 : i32
    %c0_i32_0 = arith.constant 0 : i32
    return %arg0, %c0_i32, %arg1 : i32, i32, i32
  }
}

</mosaic_0001>

<bundles_post_ra>
// kernel: tpu_custom_call.1
= control target key start
LH: loop header
LB: loop body
LE: loop exit
PB: predicated region body
PF: predicated region fallthrough
CT: control target
= control target key end

     0   :  { %11 = vsyncpa [#allocation4], 0  ;;  %s1113_s0 = inlined_call_operand.vmem [shape: bf16[2,16,20], index: 0, kind: input, shape index: {}]   ;;  %s1114_s1 = inlined_call_operand.vmem [shape: bf16[32,48], index: 1, kind: input, shape index: {}]   ;;  %s1115_s2 = inlined_call_operand.vmem [shape: f32[32,1], index: 2, kind: input, shape index: {}]   ;;  %s1116_s3 = inlined_call_operand.vmem [shape: bf16[3,4,32], index: 3, kind: input, shape index: {}]   ;;  %s1117_s4 = inlined_call_operand.vmem [shape: f32[4,1], index: 4, kind: input, shape index: {}]   ;;  %s1118_s5 = inlined_call_operand.vmem [shape: f32[2,1,16], index: 5, kind: input, shape index: {}]   ;;  %s1119_s6 = inlined_call_operand.hbm [shape: f32[2,4,16], index: 6, kind: output, shape index: {}]  }
   0x1   :  { %13 = vsyncpa [#allocation4 + $0x1], 0  ;;  %s955_s21 = smov 0   ;;  %s957_s22 = smov 0  }
   0x2   :  { %s959_s23 = smov 0   ;;  %s961_s24 = smov 0  }
   0x3   :  { %s963_s25 = smov 0   ;;  %s965_s26 = smov 0  }
   0x4 LB: > { %s697_s27 = sadd.s32 4294967295, %s912_s26   ;;  %s698_s28 = sadd.s32 4294967294, %s912_s26   ;;  %s912_s26 = sphi %s965_s26, %s19_s26   ;;  %s908_s25 = sphi %s963_s25, %s1126_s25   ;;  %s904_s24 = sphi %s961_s24, %s1125_s24   ;;  %s900_s23 = sphi %s959_s23, %s1124_s23   ;;  %s896_s22 = sphi %s957_s22, %s1123_s22   ;;  %s892_s21 = sphi %s955_s21, %s1122_s21  }
   0x5   : > { %s31_s29 = sadd.s32 1, %s908_s25  ;;  %s178_s30 = sadd.s32 1, %s900_s23 }
   0x6   : > { %p33_p0 = scmp.ge.s32.totalorder %s31_s29, 2  ;;  %p188_p1 = scmp.ne.s32.totalorder %s900_s23, %s896_s22 }
   0x7   : > { %p189_p2 = scmp.eq.s32.totalorder %s697_s27, 1  ;;  %p194_p3 = scmp.ne.s32.totalorder %s896_s22, %s892_s21 }
   0x8   : > { %s1128_s29 = smov (%p33_p0, %s31_s29), 0  ;;  %p195_p5 = scmp.eq.s32.totalorder %s698_s28, 1 }
   0x9   : > { %p995_p4 = por %p189_p2, %p188_p1  ;;  %s173_s8 = ssub.s32 %s908_s25, %s1128_s29 }
   0xa   : > { %p701_p6 = scmp.ge.s32.totalorder %s912_s26, 1  ;;  %p176_p7 = scmp.eq.s32.totalorder %s173_s8, 0 }
   0xb   : > { %p1002_p8 = por %p195_p5, %p194_p3  ;;  %p242_p9 = scmp.lt.s32.totalorder %s912_s26, 3 }
   0xc   : > { %s1008_s10 = scalar_select %p176_p7, %s900_s23, %s178_s30  }
   0xd   : > { %p243_p10 = pnand %p701_p6, %p242_p9 }
   0xe   : > { %p278_p11 = scmp.lt.s32.totalorder (!%p243_p10), %s904_s24, 1  ;;  %v832_v0 = vld [vmem:[%s1114_s1] sm:$0xff] (!%p243_p10)   ;;  %vm343_vm0 = vcmask (!%p243_p10), 392192   ;;  %v914_v2 = vmov (!%p243_p10), 0   ;;  %v310_v3 = vld [vmem:[%s1115_s2 + $0x8] sm:$0xff] (!%p243_p10)  ;;  %s915_s28 = smov (!%p243_p10), 127   ;;  %v410_v12 = vlaneseq (!%p243_p10) }
   0xf   : > { %246 = sbr.rel (%p243_p10) target bundleno = 744 (0x2e8), region = 44  ;;  %741 = vmatprep.mubr.msk.bf16.mxu0 (!%p243_p10), %vm343_vm0, %v832_v0  ;;  %v309_v1 = vld [vmem:[%s1115_s2] sm:$0xff] (!%p243_p10)  ;;  %829 = vset.pattern.permute.xlu1 (!%p243_p10), %v914_v2  ;;  %v312_v5 = vld [vmem:[%s1115_s2 + $0x18] sm:$0xff] (!%p243_p10)  ;;  %s916_s11 = smov (!%p243_p10), 126   ;;  %v311_v6 = vld [vmem:[%s1115_s2 + $0x10] sm:$0xff] (!%p243_p10)  ;;  %v917_v11 = vmov (!%p243_p10), 0.0  }
  0x10   : > { %830 = vset.pattern.permute.xlu0 (!%p243_p10), %v914_v2  ;;  %315 = vperm.xlu1 (!%p243_p10), %829, %v309_v1   ;;  %v585_v7 = vld [vmem:[%s1117_s4] sm:$0xf] (!%p243_p10)  ;;  %v833_v10 = vld [vmem:[%s1114_s1 + $0x8] sm:$0xff] (!%p243_p10)   ;;  %vm918_vm1 = vmmov (!%p243_p10), 0   ;;  %v411_v14 = vand.u32 (!%p243_p10), 127, %v410_v12  ;;  %vm426_vm5 = vcmask (!%p243_p10), 146432  }
  0x11   : > { %745 = vmatprep.subr.bf16.mxu1 (!%p243_p10), %v917_v11  ;;  %749 = vmatprep.mubr.msk.bf16.mxu1 (!%p243_p10), %vm918_vm1, %v917_v11  ;;  %v439_v39 = vld [vmem:[%s1116_s3] sm:$0x3] (!%p243_p10)  ;;  %vm440_vm6 = vcmask (!%p243_p10), 261120   ;;  %v713_v40 = vld [vmem:[%s1116_s3 + $0x4] sm:$0x3] (!%p243_p10)  ;;  %s275_s14 = sand.u32 (!%p243_p10), 1, %s896_s22  }
  0x12   : > { %v414_v16 = vadd.s32 (!%p243_p10), 4294967295, %v411_v14  ;;  %v711_v41 = vld [vmem:[%s1116_s3 + $0x2] sm:$0x3] (!%p243_p10)  ;;  %s702_s15 = sshll.u32 (!%p243_p10), %s275_s14, 2  ;;  %s717_s18 = sshll.u32 (!%p243_p10), %s904_s24, 6  ;;  %vm600_vm7 = vcmask (!%p243_p10), 125952  }
  0x13   : > { %s1066_s30 = scalar_lea.hbm (!%p243_p10), %s1119_s6, %s717_s18 }
  0x14   : > { %320 = vperm.xlu1 (!%p243_p10), %829, %v310_v3   ;;  %vm415_vm2 = vcmp.ge.s32.totalorder (!%p243_p10), %v414_v16, 0  ;;  %vm416_vm3 = vcmp.lt.s32.totalorder (!%p243_p10), %v414_v16, 16 }
  0x15   : > { %vm417_vm4 = vmand (!%p243_p10), %vm415_vm2, %vm416_vm3 }
  0x16   : > { %s1015_s13 = scalar_select %p278_p11, %s904_s24, 1 }
  0x17   : > { %s919_s24 = smov [#allocation3]  }
  0x18   : > { %s720_s16 = sshll.u32 %s1015_s13, 3  ;;  %330 = vperm.xlu1 %829, %v312_v5   ;;  %s288_s17 = scalar_lea.vmem %s1118_s5, %s1015_s13 }
  0x19   : > { %s282_s19 = scalar_lea.vmem %s1113_s0, %s720_s16  ;;  %v715_v59 = vld [vmem:[%s288_s17] ss:$0 sm:$0xff]  ;;  %s603_s13 = scalar_lea.sflag [#allocation4], %s275_s14 }
  0x1a   : > { %v831_v4 = vld [vmem:[%s282_s19] sm:$0xff]   ;;  %s277_s19 = scalar_lea.vmem [#allocation3], %s702_s15  ;;  %s838_s12 = sshll.u32 %s919_s24, 4  ;;  %s839_s12 = int_to_ptr.vmem [resolvable:$false] %s838_s12 }
  0x1b   : > { %299 = vrot.lane.b32.xlu0 %v831_v4, %s915_s28  ;;  %735 = vmatprep.subr.bf16.mxu0 %v831_v4  ;;  %s617_s20 = sshll.u32 %s277_s19, 4  ;;  %s840_s15 = scalar_lea.vmem %s839_s12, 128  ;;  %s1068_s20 = int_to_ptr.vmem [resolvable:$true] %s617_s20 }
  0x1c   : > { %736 = vmatpush3.bf16.msra.mxu0 %v831_v4  ;;  %588 = vperm.xlu1 %829, %v585_v7   ;;  %s834_s8 = scalar_lea.vmem %s1068_s20, 64  ;;  %p841_p1 = scmp.lt.s32.totalorder %s1068_s20, %s839_s12 }
  0x1d   : > { %p835_p12 = scmp.ne.s32.totalorder %s1068_s20, %s834_s8  ;;  %p842_p2 = scmp.lt.s32.totalorder %s840_s15, %s834_s8 }
  0x1f   : > { %302 = vrot.lane.b32.xlu0 %v831_v4, %s916_s11  ;;  %p836_p13 = pnand %p835_p12, %p995_p4  ;;  %p843_p3 = por %p842_p2, %p841_p1 }
  0x21   : > { %p837_p0 = pneg %p836_p13 }
  0x23   : > { %325 = vperm.xlu0 %830, %v311_v6   ;;  %p844_p5 = pnand %p843_p3, %p837_p0 }
  0x8d   : > { %v300_v8 = vpop.permute.xlu0 %299 }
  0x8e   : > { %737 = vmatprep.subr.bf16.mxu0 %v300_v8 }
  0x8f   : > { %738 = vmatpush3.bf16.msra.mxu0 %v300_v8  ;;  %v316_v13 = vpop.permute.xlu1 %315 }
  0x91   : > { %v303_v9 = vpop.permute.xlu0 %302 }
  0x92   : > { %739 = vmatprep.subr.bf16.mxu0 %v303_v9 }
  0x93   : > { %740 = vmatpush3.bf16.msra.mxu0 %v303_v9  ;;  %v321_v15 = vpop.permute.xlu1 %320 }
  0x94   : > { %761 = vmatprep.subr.bf16.mxu0 %v917_v11 }
  0x96   : > { %742 = vmatmul.mubr.msk.bf16.vlgmr.msra.gmra.mrb[0].mxu0 %vm343_vm0, %v833_v10 }
  0x97   : > { %765 = vmatprep.mubr.msk.bf16.mxu0 %vm918_vm1, %v917_v11  ;;  %v331_v21 = vpop.permute.xlu1 %330 }
  0x9b   : > { %v589_v54 = vpop.permute.xlu1 %588 }
  0xa2   : > { %v326_v17 = vpop.permute.xlu0 %325 }
 0x169   : > { %v743_v18 = vpop.f32.mrb[0].mxu0 }
 0x16a   : > { %v393_v19 = vadd.f32 %v743_v18, %v326_v17  ;;  %v384_v20 = vpop.f32.mrb[1].mxu0 }
 0x16b   : > { %v385_v22 = vadd.f32 %v384_v20, %v316_v13  ;;  %v744_v23 = vpop.f32.mrb[2].mxu0 }
 0x16c   : > { %v401_v24 = vmax.f32 %v393_v19, 0.0  ;;  %v396_v25 = vadd.f32 %v744_v23, %v331_v21  ;;  %v387_v26 = vpop.f32.mrb[3].mxu0 }
 0x16d   : > { %v399_v27 = vmax.f32 %v385_v22, 0.0  ;;  %v388_v28 = vadd.f32 %v387_v26, %v321_v15 }
 0x16e   : > { %v402_v29 = vmax.f32 %v396_v25, 0.0  ;;  %v422_v31 = vsel %vm417_vm4, %v401_v24, 0.0 }
 0x16f   : > { %v400_v30 = vmax.f32 %v388_v28, 0.0  ;;  %v420_v33 = vsel %vm417_vm4, %v399_v27, 0.0 }
 0x170   : > { %v423_v32 = vsel %vm417_vm4, %v402_v29, 0.0 }
 0x171   : > { %v425_v34 = vpack.c.bf16 %v423_v32, %v422_v31  ;;  %v421_v35 = vsel %vm417_vm4, %v400_v30, 0.0 }
 0x172   : > { %v424_v36 = vpack.c.bf16 %v421_v35, %v420_v33 }
 0x173   : > { %428 = vst.msk [vmem:[#allocation2 + $0x8] sm:$0xff] %vm426_vm5, %v425_v34 }
 0x174   : > { %427 = vst.msk [vmem:[#allocation2] sm:$0xff] %vm426_vm5, %v424_v36 }
 0x17a   : > { %v438_v38 = vld [vmem:[#allocation2 + $0x8] sm:$0xff] }
 0x17b   : > { %v437_v37 = vld [vmem:[#allocation2] sm:$0xff] }
 0x17c   : > { %746 = vmatpush3.bf16.msra.mxu1 %v437_v37  ;;  %762 = vmatpush3.bf16.msra.mxu0 %v437_v37 }
 0x17d   : > { %747 = vmatprep.subr.bf16.mxu1 %v917_v11  ;;  %763 = vmatprep.subr.bf16.mxu0 %v917_v11 }
 0x180   : > { %748 = vmatpush3.bf16.msra.mxu1 %v438_v38  ;;  %764 = vmatpush3.bf16.msra.mxu0 %v438_v38 }
 0x181   : > { %753 = vmatprep.subr.bf16.mxu1 %v917_v11 }
 0x183   : > { %750 = vmatmul.mubr.msk.bf16.vlgmr.msra.gmra.mrb[0].mxu1 %vm440_vm6, %v439_v39  ;;  %766 = vmatmul.mubr.msk.bf16.vlgmr.msra.gmra.mrb[4].mxu0 %vm440_vm6, %v713_v40 }
 0x184   : > { %754 = vmatpush3.bf16.msra.mxu1 %v437_v37  ;;  %757 = vmatprep.mubr.msk.bf16.mxu1 %vm918_vm1, %v917_v11 }
 0x185   : > { %755 = vmatprep.subr.bf16.mxu1 %v917_v11 }
 0x188   : > { %756 = vmatpush3.bf16.msra.mxu1 %v438_v38 }
 0x18b   : > { %758 = vmatmul.mubr.msk.bf16.vlgmr.msra.gmra.mrb[4].mxu1 %vm440_vm6, %v711_v41 }
 0x256   : > { %v478_v42 = vpop.f32.mrb[0].mxu1  ;;  %v574_v43 = vpop.f32.mrb[4].mxu0 }
 0x257   : > { %v751_v44 = vpop.f32.mrb[1].mxu1  ;;  %v767_v45 = vpop.f32.mrb[5].mxu0  ;;  %581 = vrot.lane.b32.xlu1 %v574_v43, %s916_s11 }
 0x258   : > { %v481_v46 = vpop.f32.mrb[2].mxu1  ;;  %v577_v47 = vpop.f32.mrb[6].mxu0 }
 0x259   : > { %v752_v48 = vpop.f32.mrb[3].mxu1  ;;  %v768_v49 = vpop.f32.mrb[7].mxu0 }
 0x25e   : > { %v524_v50 = vpop.f32.mrb[4].mxu1 }
 0x25f   : > { %531 = vrot.lane.b32.xlu0 %v524_v50, %s915_s28  ;;  %v759_v51 = vpop.f32.mrb[5].mxu1 }
 0x260   : > { %v527_v52 = vpop.f32.mrb[6].mxu1 }
 0x261   : > { %v760_v53 = vpop.f32.mrb[7].mxu1 }
 0x2c9   : > { %v582_v56 = vpop.permute.xlu1 %581 }
 0x2d1   : > { %v532_v55 = vpop.permute.xlu0 %531 }
 0x2d2   : > { %v534_v57 = vadd.f32 %v532_v55, %v478_v42 }
 0x2d4   : > { %v584_v58 = vadd.f32 %v582_v56, %v534_v57 }
 0x2d6   : > { %v591_v60 = vadd.f32 %v589_v54, %v584_v58 }
 0x2d8   : > { %v599_v61 = vmul.f32 %v715_v59, %v591_v60 }
 0x2da   : > { %601 = vst.msk [vmem:[%s277_s19] sm:$0xf] %vm600_vm7, %v599_v61 }
 0x2db   : > { %847 = shalt.err (!%p844_p5)
}
 0x2dc   : > { %s848_s14 = scalar_lea.hbm %s1066_s30, 64  ;;  %s852_s17 = scalar_lea.hbm %s1119_s6, 128 }
 0x2dd   : > { %p849_p6 = scmp.ne.s32.totalorder %s1066_s30, %s848_s14  ;;  %p853_p10 = scmp.lt.u32.totalorder %s1066_s30, %s1119_s6 }
 0x2de   : > { %p854_p11 = scmp.lt.u32.totalorder %s852_s17, %s848_s14  ;;  %p856_p13 = scmp.lt.u32.totalorder %s848_s14, %s1066_s30 }
 0x2df   : > { %p850_p7 = pnand %p849_p6, %p995_p4 }
 0x2e0   : > { %p855_p12 = por %p854_p11, %p853_p10 }
 0x2e1   : > { %p851_p9 = pneg %p850_p7 }
 0x2e2   : > { %p857_p0 = por %p856_p13, %p855_p12 }
 0x2e4   : > { %p858_p1 = pnand %p857_p0, %p851_p9 }
 0x2e6   : > { %861 = shalt.err (!%p858_p1)
}
 0x2e7   : > { %769 = dma.vmem_to_hbm [thread:$0]  (%p995_p4), %s1068_s20, 64, %s1066_s30, %s603_s13  }
 0x2e8 PF: > { %p775_p2 = scmp.ge.s32.totalorder %s912_s26, 2  ;;  %s629_s28 = sand.u32 1, %s892_s21  }
 0x2e9   : > { %s630_s27 = scalar_lea.sflag [#allocation4], %s629_s28 }
 0x2ea   : > { %p772_p3 = pnand %p775_p2, %p1002_p8 }
 0x2ec   : > { %887 = dma.done.wait (!%p772_p3), %s630_s27, 64  }
 0x2ed   : > { %889 = vsyncadd (!%p772_p3), %s630_s27, 4294967232  ;;  %s19_s26 = sadd.s32 1, %s912_s26   ;;  %s1122_s21 = smov %s896_s22 }
 0x2ee   : > { %p16_p5 = scmp.ge.s32.totalorder %s19_s26, 4   ;;  %s1123_s22 = smov %s900_s23 }
 0x2ef   : > { %s1124_s23 = smov %s1008_s10  ;;  %s1125_s24 = smov %s908_s25 }
 0x2f0   : > { %s1126_s25 = smov %s1128_s29  ;;  %18 = sbr.rel (!%p16_p5) target bundleno = 4 (0x4), region = 92 }
 0x2f7   :  { %635 = vsyncpa [#allocation4], 1 }
 0x2f8   :  { %637 = vsyncpa [#allocation4 + $0x1], 1 }

// kernel: tpu_custom_call.1
= control target key start
LH: loop header
LB: loop body
LE: loop exit
PB: predicated region body
PF: predicated region fallthrough
CT: control target
= control target key end

     0   :  { %11 = vsyncpa [#allocation4], 0  ;;  %s1113_s0 = inlined_call_operand.vmem [shape: bf16[2,16,20], index: 0, kind: input, shape index: {}]   ;;  %s1114_s1 = inlined_call_operand.vmem [shape: bf16[32,48], index: 1, kind: input, shape index: {}]   ;;  %s1115_s2 = inlined_call_operand.vmem [shape: f32[32,1], index: 2, kind: input, shape index: {}]   ;;  %s1116_s3 = inlined_call_operand.vmem [shape: bf16[3,4,32], index: 3, kind: input, shape index: {}]   ;;  %s1117_s4 = inlined_call_operand.vmem [shape: f32[4,1], index: 4, kind: input, shape index: {}]   ;;  %s1118_s5 = inlined_call_operand.vmem [shape: f32[2,1,16], index: 5, kind: input, shape index: {}]   ;;  %s1119_s6 = inlined_call_operand.hbm [shape: f32[2,4,16], index: 6, kind: output, shape index: {}]  }
   0x1   :  { %13 = vsyncpa [#allocation4 + $0x1], 0  ;;  %s955_s21 = smov 0   ;;  %s957_s22 = smov 0  }
   0x2   :  { %s959_s23 = smov 0   ;;  %s961_s24 = smov 0  }
   0x3   :  { %s963_s25 = smov 0   ;;  %s965_s26 = smov 0  }
   0x4 LB: > { %s697_s27 = sadd.s32 4294967295, %s912_s26   ;;  %s698_s28 = sadd.s32 4294967294, %s912_s26   ;;  %s912_s26 = sphi %s965_s26, %s19_s26   ;;  %s908_s25 = sphi %s963_s25, %s1126_s25   ;;  %s904_s24 = sphi %s961_s24, %s1125_s24   ;;  %s900_s23 = sphi %s959_s23, %s1124_s23   ;;  %s896_s22 = sphi %s957_s22, %s1123_s22   ;;  %s892_s21 = sphi %s955_s21, %s1122_s21  }
   0x5   : > { %s31_s29 = sadd.s32 1, %s908_s25  ;;  %s178_s30 = sadd.s32 1, %s900_s23 }
   0x6   : > { %p33_p0 = scmp.ge.s32.totalorder %s31_s29, 2  ;;  %p188_p1 = scmp.ne.s32.totalorder %s900_s23, %s896_s22 }
   0x7   : > { %p189_p2 = scmp.eq.s32.totalorder %s697_s27, 1  ;;  %p194_p3 = scmp.ne.s32.totalorder %s896_s22, %s892_s21 }
   0x8   : > { %s1128_s29 = smov (%p33_p0, %s31_s29), 0  ;;  %p195_p5 = scmp.eq.s32.totalorder %s698_s28, 1 }
   0x9   : > { %p995_p4 = por %p189_p2, %p188_p1  ;;  %s173_s8 = ssub.s32 %s908_s25, %s1128_s29 }
   0xa   : > { %p701_p6 = scmp.ge.s32.totalorder %s912_s26, 1  ;;  %p176_p7 = scmp.eq.s32.totalorder %s173_s8, 0 }
   0xb   : > { %p1002_p8 = por %p195_p5, %p194_p3  ;;  %p242_p9 = scmp.lt.s32.totalorder %s912_s26, 3 }
   0xc   : > { %s1008_s10 = scalar_select %p176_p7, %s900_s23, %s178_s30  }
   0xd   : > { %p243_p10 = pnand %p701_p6, %p242_p9 }
   0xe   : > { %p278_p11 = scmp.lt.s32.totalorder (!%p243_p10), %s904_s24, 1  ;;  %v832_v0 = vld [vmem:[%s1114_s1] sm:$0xff] (!%p243_p10)   ;;  %vm343_vm0 = vcmask (!%p243_p10), 392192   ;;  %v914_v2 = vmov (!%p243_p10), 0   ;;  %v310_v3 = vld [vmem:[%s1115_s2 + $0x8] sm:$0xff] (!%p243_p10)  ;;  %s915_s28 = smov (!%p243_p10), 127   ;;  %v410_v12 = vlaneseq (!%p243_p10) }
   0xf   : > { %246 = sbr.rel (%p243_p10) target bundleno = 744 (0x2e8), region = 44  ;;  %741 = vmatprep.mubr.msk.bf16.mxu0 (!%p243_p10), %vm343_vm0, %v832_v0  ;;  %v309_v1 = vld [vmem:[%s1115_s2] sm:$0xff] (!%p243_p10)  ;;  %829 = vset.pattern.permute.xlu1 (!%p243_p10), %v914_v2  ;;  %v312_v5 = vld [vmem:[%s1115_s2 + $0x18] sm:$0xff] (!%p243_p10)  ;;  %s916_s11 = smov (!%p243_p10), 126   ;;  %v311_v6 = vld [vmem:[%s1115_s2 + $0x10] sm:$0xff] (!%p243_p10)  ;;  %v917_v11 = vmov (!%p243_p10), 0.0  }
  0x10   : > { %830 = vset.pattern.permute.xlu0 (!%p243_p10), %v914_v2  ;;  %315 = vperm.xlu1 (!%p243_p10), %829, %v309_v1   ;;  %v585_v7 = vld [vmem:[%s1117_s4] sm:$0xf] (!%p243_p10)  ;;  %v833_v10 = vld [vmem:[%s1114_s1 + $0x8] sm:$0xff] (!%p243_p10)   ;;  %vm918_vm1 = vmmov (!%p243_p10), 0   ;;  %v411_v14 = vand.u32 (!%p243_p10), 127, %v410_v12  ;;  %vm426_vm5 = vcmask (!%p243_p10), 146432  }
  0x11   : > { %745 = vmatprep.subr.bf16.mxu1 (!%p243_p10), %v917_v11  ;;  %749 = vmatprep.mubr.msk.bf16.mxu1 (!%p243_p10), %vm918_vm1, %v917_v11  ;;  %v439_v39 = vld [vmem:[%s1116_s3] sm:$0x3] (!%p243_p10)  ;;  %vm440_vm6 = vcmask (!%p243_p10), 261120   ;;  %v713_v40 = vld [vmem:[%s1116_s3 + $0x4] sm:$0x3] (!%p243_p10)  ;;  %s275_s14 = sand.u32 (!%p243_p10), 1, %s896_s22  }
  0x12   : > { %v414_v16 = vadd.s32 (!%p243_p10), 4294967295, %v411_v14  ;;  %v711_v41 = vld [vmem:[%s1116_s3 + $0x2] sm:$0x3] (!%p243_p10)  ;;  %s702_s15 = sshll.u32 (!%p243_p10), %s275_s14, 2  ;;  %s717_s18 = sshll.u32 (!%p243_p10), %s904_s24, 6  ;;  %vm600_vm7 = vcmask (!%p243_p10), 125952  }
  0x13   : > { %s1066_s30 = scalar_lea.hbm (!%p243_p10), %s1119_s6, %s717_s18 }
  0x14   : > { %320 = vperm.xlu1 (!%p243_p10), %829, %v310_v3   ;;  %vm415_vm2 = vcmp.ge.s32.totalorder (!%p243_p10), %v414_v16, 0  ;;  %vm416_vm3 = vcmp.lt.s32.totalorder (!%p243_p10), %v414_v16, 16 }
  0x15   : > { %vm417_vm4 = vmand (!%p243_p10), %vm415_vm2, %vm416_vm3 }
  0x16   : > { %s1015_s13 = scalar_select %p278_p11, %s904_s24, 1 }
  0x17   : > { %s919_s24 = smov [#allocation3]  }
  0x18   : > { %s720_s16 = sshll.u32 %s1015_s13, 3  ;;  %330 = vperm.xlu1 %829, %v312_v5   ;;  %s288_s17 = scalar_lea.vmem %s1118_s5, %s1015_s13 }
  0x19   : > { %s282_s19 = scalar_lea.vmem %s1113_s0, %s720_s16  ;;  %v715_v59 = vld [vmem:[%s288_s17] ss:$0 sm:$0xff]  ;;  %s603_s13 = scalar_lea.sflag [#allocation4], %s275_s14 }
  0x1a   : > { %v831_v4 = vld [vmem:[%s282_s19] sm:$0xff]   ;;  %s277_s19 = scalar_lea.vmem [#allocation3], %s702_s15  ;;  %s838_s12 = sshll.u32 %s919_s24, 4  ;;  %s839_s12 = int_to_ptr.vmem [resolvable:$false] %s838_s12 }
  0x1b   : > { %299 = vrot.lane.b32.xlu0 %v831_v4, %s915_s28  ;;  %735 = vmatprep.subr.bf16.mxu0 %v831_v4  ;;  %s617_s20 = sshll.u32 %s277_s19, 4  ;;  %s840_s15 = scalar_lea.vmem %s839_s12, 128  ;;  %s1068_s20 = int_to_ptr.vmem [resolvable:$true] %s617_s20 }
  0x1c   : > { %736 = vmatpush3.bf16.msra.mxu0 %v831_v4  ;;  %588 = vperm.xlu1 %829, %v585_v7   ;;  %s834_s8 = scalar_lea.vmem %s1068_s20, 64  ;;  %p841_p1 = scmp.lt.s32.totalorder %s1068_s20, %s839_s12 }
  0x1d   : > { %p835_p12 = scmp.ne.s32.totalorder %s1068_s20, %s834_s8  ;;  %p842_p2 = scmp.lt.s32.totalorder %s840_s15, %s834_s8 }
  0x1f   : > { %302 = vrot.lane.b32.xlu0 %v831_v4, %s916_s11  ;;  %p836_p13 = pnand %p835_p12, %p995_p4  ;;  %p843_p3 = por %p842_p2, %p841_p1 }
  0x21   : > { %p837_p0 = pneg %p836_p13 }
  0x23   : > { %325 = vperm.xlu0 %830, %v311_v6   ;;  %p844_p5 = pnand %p843_p3, %p837_p0 }
  0x8d   : > { %v300_v8 = vpop.permute.xlu0 %299 }
  0x8e   : > { %737 = vmatprep.subr.bf16.mxu0 %v300_v8 }
  0x8f   : > { %738 = vmatpush3.bf16.msra.mxu0 %v300_v8  ;;  %v316_v13 = vpop.permute.xlu1 %315 }
  0x91   : > { %v303_v9 = vpop.permute.xlu0 %302 }
  0x92   : > { %739 = vmatprep.subr.bf16.mxu0 %v303_v9 }
  0x93   : > { %740 = vmatpush3.bf16.msra.mxu0 %v303_v9  ;;  %v321_v15 = vpop.permute.xlu1 %320 }
  0x94   : > { %761 = vmatprep.subr.bf16.mxu0 %v917_v11 }
  0x96   : > { %742 = vmatmul.mubr.msk.bf16.vlgmr.msra.gmra.mrb[0].mxu0 %vm343_vm0, %v833_v10 }
  0x97   : > { %765 = vmatprep.mubr.msk.bf16.mxu0 %vm918_vm1, %v917_v11  ;;  %v331_v21 = vpop.permute.xlu1 %330 }
  0x9b   : > { %v589_v54 = vpop.permute.xlu1 %588 }
  0xa2   : > { %v326_v17 = vpop.permute.xlu0 %325 }
 0x169   : > { %v743_v18 = vpop.f32.mrb[0].mxu0 }
 0x16a   : > { %v393_v19 = vadd.f32 %v743_v18, %v326_v17  ;;  %v384_v20 = vpop.f32.mrb[1].mxu0 }
 0x16b   : > { %v385_v22 = vadd.f32 %v384_v20, %v316_v13  ;;  %v744_v23 = vpop.f32.mrb[2].mxu0 }
 0x16c   : > { %v401_v24 = vmax.f32 %v393_v19, 0.0  ;;  %v396_v25 = vadd.f32 %v744_v23, %v331_v21  ;;  %v387_v26 = vpop.f32.mrb[3].mxu0 }
 0x16d   : > { %v399_v27 = vmax.f32 %v385_v22, 0.0  ;;  %v388_v28 = vadd.f32 %v387_v26, %v321_v15 }
 0x16e   : > { %v402_v29 = vmax.f32 %v396_v25, 0.0  ;;  %v422_v31 = vsel %vm417_vm4, %v401_v24, 0.0 }
 0x16f   : > { %v400_v30 = vmax.f32 %v388_v28, 0.0  ;;  %v420_v33 = vsel %vm417_vm4, %v399_v27, 0.0 }
 0x170   : > { %v423_v32 = vsel %vm417_vm4, %v402_v29, 0.0 }
 0x171   : > { %v425_v34 = vpack.c.bf16 %v423_v32, %v422_v31  ;;  %v421_v35 = vsel %vm417_vm4, %v400_v30, 0.0 }
 0x172   : > { %v424_v36 = vpack.c.bf16 %v421_v35, %v420_v33 }
 0x173   : > { %428 = vst.msk [vmem:[#allocation2 + $0x8] sm:$0xff] %vm426_vm5, %v425_v34 }
 0x174   : > { %427 = vst.msk [vmem:[#allocation2] sm:$0xff] %vm426_vm5, %v424_v36 }
 0x17a   : > { %v438_v38 = vld [vmem:[#allocation2 + $0x8] sm:$0xff] }
 0x17b   : > { %v437_v37 = vld [vmem:[#allocation2] sm:$0xff] }
 0x17c   : > { %746 = vmatpush3.bf16.msra.mxu1 %v437_v37  ;;  %762 = vmatpush3.bf16.msra.mxu0 %v437_v37 }
 0x17d   : > { %747 = vmatprep.subr.bf16.mxu1 %v917_v11  ;;  %763 = vmatprep.subr.bf16.mxu0 %v917_v11 }
 0x180   : > { %748 = vmatpush3.bf16.msra.mxu1 %v438_v38  ;;  %764 = vmatpush3.bf16.msra.mxu0 %v438_v38 }
 0x181   : > { %753 = vmatprep.subr.bf16.mxu1 %v917_v11 }
 0x183   : > { %750 = vmatmul.mubr.msk.bf16.vlgmr.msra.gmra.mrb[0].mxu1 %vm440_vm6, %v439_v39  ;;  %766 = vmatmul.mubr.msk.bf16.vlgmr.msra.gmra.mrb[4].mxu0 %vm440_vm6, %v713_v40 }
 0x184   : > { %754 = vmatpush3.bf16.msra.mxu1 %v437_v37  ;;  %757 = vmatprep.mubr.msk.bf16.mxu1 %vm918_vm1, %v917_v11 }
 0x185   : > { %755 = vmatprep.subr.bf16.mxu1 %v917_v11 }
 0x188   : > { %756 = vmatpush3.bf16.msra.mxu1 %v438_v38 }
 0x18b   : > { %758 = vmatmul.mubr.msk.bf16.vlgmr.msra.gmra.mrb[4].mxu1 %vm440_vm6, %v711_v41 }
 0x256   : > { %v478_v42 = vpop.f32.mrb[0].mxu1  ;;  %v574_v43 = vpop.f32.mrb[4].mxu0 }
 0x257   : > { %v751_v44 = vpop.f32.mrb[1].mxu1  ;;  %v767_v45 = vpop.f32.mrb[5].mxu0  ;;  %581 = vrot.lane.b32.xlu1 %v574_v43, %s916_s11 }
 0x258   : > { %v481_v46 = vpop.f32.mrb[2].mxu1  ;;  %v577_v47 = vpop.f32.mrb[6].mxu0 }
 0x259   : > { %v752_v48 = vpop.f32.mrb[3].mxu1  ;;  %v768_v49 = vpop.f32.mrb[7].mxu0 }
 0x25e   : > { %v524_v50 = vpop.f32.mrb[4].mxu1 }
 0x25f   : > { %531 = vrot.lane.b32.xlu0 %v524_v50, %s915_s28  ;;  %v759_v51 = vpop.f32.mrb[5].mxu1 }
 0x260   : > { %v527_v52 = vpop.f32.mrb[6].mxu1 }
 0x261   : > { %v760_v53 = vpop.f32.mrb[7].mxu1 }
 0x2c9   : > { %v582_v56 = vpop.permute.xlu1 %581 }
 0x2d1   : > { %v532_v55 = vpop.permute.xlu0 %531 }
 0x2d2   : > { %v534_v57 = vadd.f32 %v532_v55, %v478_v42 }
 0x2d4   : > { %v584_v58 = vadd.f32 %v582_v56, %v534_v57 }
 0x2d6   : > { %v591_v60 = vadd.f32 %v589_v54, %v584_v58 }
 0x2d8   : > { %v599_v61 = vmul.f32 %v715_v59, %v591_v60 }
 0x2da   : > { %601 = vst.msk [vmem:[%s277_s19] sm:$0xf] %vm600_vm7, %v599_v61 }
 0x2db   : > { %847 = shalt.err (!%p844_p5)
}
 0x2dc   : > { %s848_s14 = scalar_lea.hbm %s1066_s30, 64  ;;  %s852_s17 = scalar_lea.hbm %s1119_s6, 128 }
 0x2dd   : > { %p849_p6 = scmp.ne.s32.totalorder %s1066_s30, %s848_s14  ;;  %p853_p10 = scmp.lt.u32.totalorder %s1066_s30, %s1119_s6 }
 0x2de   : > { %p854_p11 = scmp.lt.u32.totalorder %s852_s17, %s848_s14  ;;  %p856_p13 = scmp.lt.u32.totalorder %s848_s14, %s1066_s30 }
 0x2df   : > { %p850_p7 = pnand %p849_p6, %p995_p4 }
 0x2e0   : > { %p855_p12 = por %p854_p11, %p853_p10 }
 0x2e1   : > { %p851_p9 = pneg %p850_p7 }
 0x2e2   : > { %p857_p0 = por %p856_p13, %p855_p12 }
 0x2e4   : > { %p858_p1 = pnand %p857_p0, %p851_p9 }
 0x2e6   : > { %861 = shalt.err (!%p858_p1)
}
 0x2e7   : > { %769 = dma.vmem_to_hbm [thread:$0]  (%p995_p4), %s1068_s20, 64, %s1066_s30, %s603_s13  }
 0x2e8 PF: > { %p775_p2 = scmp.ge.s32.totalorder %s912_s26, 2  ;;  %s629_s28 = sand.u32 1, %s892_s21  }
 0x2e9   : > { %s630_s27 = scalar_lea.sflag [#allocation4], %s629_s28 }
 0x2ea   : > { %p772_p3 = pnand %p775_p2, %p1002_p8 }
 0x2ec   : > { %887 = dma.done.wait (!%p772_p3), %s630_s27, 64  }
 0x2ed   : > { %889 = vsyncadd (!%p772_p3), %s630_s27, 4294967232  ;;  %s19_s26 = sadd.s32 1, %s912_s26   ;;  %s1122_s21 = smov %s896_s22 }
 0x2ee   : > { %p16_p5 = scmp.ge.s32.totalorder %s19_s26, 4   ;;  %s1123_s22 = smov %s900_s23 }
 0x2ef   : > { %s1124_s23 = smov %s1008_s10  ;;  %s1125_s24 = smov %s908_s25 }
 0x2f0   : > { %s1126_s25 = smov %s1128_s29  ;;  %18 = sbr.rel (!%p16_p5) target bundleno = 4 (0x4), region = 92 }
 0x2f7   :  { %635 = vsyncpa [#allocation4], 1 }
 0x2f8   :  { %637 = vsyncpa [#allocation4 + $0x1], 1 }

</bundles_post_ra>
